<compile_context>
chip_gen: v6e
topology: v6e:2x2x1
jax: 0.10.0
libtpu: 0.0.40
codegen_flags: <defaults>
</compile_context>

<pallas_src>
import jax
import jax.numpy as jnp
from jax.experimental import pallas as pl
from jax.experimental.pallas import tpu as pltpu

LANE = 128                  # vreg lane width
SUBLANE = 8                 # vreg sublane width (f32)
SINGLE_BLOCK_MAX_ROWS = 128  # below this, skipping grid/pipeline machinery beats 2-way sharding
MAX_BATCH_TILE = 4096        # keeps double-buffered x/out tiles far under v5e's 16 MiB scoped VMEM


def _round_up(n, m):
    return ((n + m - 1) // m) * m


def mlp_kernel(x_ref, w1_ref, b1_ref, w2_ref, b2_ref, o_ref):
    # Hidden layer: (TB, D_in) @ (D_in, H) + (1, H), ReLU. f32 MXU accumulation.
    h = jnp.dot(x_ref[...], w1_ref[...], preferred_element_type=jnp.float32)
    h = jnp.maximum(h + b1_ref[...], 0.0)
    # Output layer: (TB, H) @ (H, D_out) + (1, D_out). Stays f32 end to end.
    y = jnp.dot(h, w2_ref[...], preferred_element_type=jnp.float32)
    o_ref[...] = (y + b2_ref[...]).astype(o_ref.dtype)


def pad_params(w1, b1, w2, b2):
    """One-time lane padding of the *hidden* dim to a multiple of 128.

    Hoisted out of the per-call path so the forward never emits jnp.pad ops for the
    weights. Zero padding is mathematically a no-op: padded hidden columns produce
    relu(0 + 0) = 0 and the corresponding W2 rows are 0. The output dim is left
    unpadded on purpose (see module docstring).
    """
    h_dim = w1.shape[1]
    h_pad = _round_up(h_dim, LANE)
    if h_pad != h_dim:
        w1 = jnp.pad(w1, ((0, 0), (0, h_pad - h_dim)))
        b1 = jnp.pad(b1, ((0, 0), (0, h_pad - h_dim)))
        w2 = jnp.pad(w2, ((0, h_pad - h_dim), (0, 0)))
    return w1, b1, w2, b2


def disease_predictor_forward(x, w1, b1, w2, b2, *, batch_tile=2048):
    """Full MLP forward in one Pallas invocation.

    Small batches run as a single VMEM-resident block (no grid). Larger batches are
    tiled over a 1-D "parallel" batch grid (>= 2 tiles, so v7x uses both TensorCores)
    with the weights/biases kept VMEM-resident across all grid steps.
    """
    batch, d_in = x.shape
    h_dim = w1.shape[1]          # possibly pre-padded to a multiple of 128 by pad_params
    d_out = w2.shape[1]

    # Sanitize the tile: multiple of 8 (sublane rule) and capped for v5e VMEM headroom.
    batch_tile = _round_up(max(SUBLANE, min(batch_tile, MAX_BATCH_TILE)), SUBLANE)

    itemsize = jnp.dtype(x.dtype).itemsize
    param_bytes = (w1.size + b1.size + w2.size + b2.size) * itemsize

    b_min = _round_up(batch, SUBLANE)

    if b_min <= SINGLE_BLOCK_MAX_ROWS:
        # --- single-block fast path: whole problem lives in VMEM, no grid / pipelining ---
        xp = x if b_min == batch else jnp.pad(x, ((0, b_min - batch), (0, 0)))
        cost = pl.CostEstimate(
            flops=2 * b_min * (d_in * h_dim + h_dim * d_out),
            transcendentals=0,
            bytes_accessed=(xp.size + b_min * d_out) * itemsize + param_bytes,
        )
        out = pl.pallas_call(
            mlp_kernel,
            out_shape=jax.ShapeDtypeStruct((b_min, d_out), x.dtype),
            in_specs=[pl.BlockSpec(memory_space=pltpu.MemorySpace.VMEM)] * 5,
            out_specs=pl.BlockSpec(memory_space=pltpu.MemorySpace.VMEM),
            cost_estimate=cost,
        )(xp, w1, b1, w2, b2)
        return out if b_min == batch else out[:batch]

    # --- batch-tiled path ---
    # Ensure at least 2 grid tiles (v7x: shard over both TensorCores), but never exceed
    # batch_tile rows per tile. Padded batch rows compute garbage (relu(b1) @ W2 + b2) in
    # the last tile; that is harmless because they are sliced off below.
    half = _round_up(pl.cdiv(b_min, 2), SUBLANE)
    tb = min(batch_tile, half)
    b_pad = _round_up(batch, tb)
    n_tiles = b_pad // tb
    xp = x if b_pad == batch else jnp.pad(x, ((0, b_pad - batch), (0, 0)))

    cost = pl.CostEstimate(
        flops=2 * b_pad * (d_in * h_dim + h_dim * d_out),
        transcendentals=0,
        bytes_accessed=(xp.size + b_pad * d_out) * itemsize + param_bytes,
    )

    out = pl.pallas_call(
        mlp_kernel,
        out_shape=jax.ShapeDtypeStruct((b_pad, d_out), x.dtype),
        grid_spec=pltpu.PrefetchScalarGridSpec(
            num_scalar_prefetch=0,
            grid=(n_tiles,),
            in_specs=[
                pl.BlockSpec((tb, d_in), lambda i: (i, 0)),     # x: blocked on batch
                pl.BlockSpec((d_in, h_dim), lambda i: (0, 0)),  # W1: resident
                pl.BlockSpec((1, h_dim), lambda i: (0, 0)),     # b1: resident
                pl.BlockSpec((h_dim, d_out), lambda i: (0, 0)), # W2: resident
                pl.BlockSpec((1, d_out), lambda i: (0, 0)),     # b2: resident
            ],
            # Last dim d_out equals the full array dim -> allowed without 128-padding;
            # writes 64 B/row instead of 512 B/row.
            out_specs=pl.BlockSpec((tb, d_out), lambda i: (i, 0)),
        ),
        compiler_params=pltpu.CompilerParams(
            dimension_semantics=("parallel",)),
        cost_estimate=cost,
    )(xp, w1, b1, w2, b2)

    return out if b_pad == batch else out[:batch]


def init_params(key, input_size, hidden_size, output_size, dtype=jnp.float32):
    """Deterministic synthetic parameters (PyTorch-style uniform fan-in init)."""
    k1, k2, k3, k4 = jax.random.split(key, 4)
    bound1 = 1.0 / jnp.sqrt(input_size)
    bound2 = 1.0 / jnp.sqrt(hidden_size)
    w1 = jax.random.uniform(k1, (input_size, hidden_size), dtype, -bound1, bound1)
    b1 = jax.random.uniform(k2, (1, hidden_size), dtype, -bound1, bound1)
    w2 = jax.random.uniform(k3, (hidden_size, output_size), dtype, -bound2, bound2)
    b2 = jax.random.uniform(k4, (1, output_size), dtype, -bound2, bound2)
    return w1, b1, w2, b2


def _reference(x, w1, b1, w2, b2):
    return jnp.maximum(x @ w1 + b1, 0.0) @ w2 + b2


if __name__ == "__main__":
    # Shapes consistent with the module: symptom features -> hidden=64 -> prognosis classes.
    input_size, hidden_size, output_size = 32, 64, 16

    key = jax.random.PRNGKey(0)
    kx, kp, kx2 = jax.random.split(key, 3)
    w1, b1, w2, b2 = init_params(kp, input_size, hidden_size, output_size)
    # Hidden-dim lane padding hoisted out of the forward: done once here.
    w1p, b1p, w2p, b2p = pad_params(w1, b1, w2, b2)

    fwd = jax.jit(disease_predictor_forward)

    # 1) Small batch: exercises the single-block (no-grid) path.
    x_small = jax.random.normal(kx, (8, input_size), jnp.float32)  # StandardScaler-like input
    out_small = jax.block_until_ready(fwd(x_small, w1p, b1p, w2p, b2p))
    ref_small = _reference(x_small, w1, b1, w2, b2)
    assert out_small.shape == (8, output_size)
    assert jnp.allclose(out_small, ref_small, atol=1e-5, rtol=1e-5)

    # 2) Larger batch: exercises the batch-tiled "parallel" grid path (>= 2 tiles).
    x_big = jax.random.normal(kx2, (300, input_size), jnp.float32)
    out_big = jax.block_until_ready(fwd(x_big, w1p, b1p, w2p, b2p))
    ref_big = _reference(x_big, w1, b1, w2, b2)
    assert out_big.shape == (300, output_size)
    assert jnp.allclose(out_big, ref_big, atol=1e-5, rtol=1e-5)

    print("KERNEL_OK")
</pallas_src>

<mosaic_0001>
module attributes {stable_mosaic.version = 11 : i64} {
  func.func @mlp_kernel(%arg0: memref<8x32xf32, #tpu.memory_space<vmem>>, %arg1: memref<32x128xf32, #tpu.memory_space<vmem>>, %arg2: memref<1x128xf32, #tpu.memory_space<vmem>>, %arg3: memref<128x16xf32, #tpu.memory_space<vmem>>, %arg4: memref<1x16xf32, #tpu.memory_space<vmem>>, %arg5: memref<8x16xf32, #tpu.memory_space<vmem>>) attributes {dimension_semantics = [], scalar_prefetch = 0 : i64, scratch_operands = 0 : i64, tpu.core_type = #tpu.core_type<tc>} {
    %c0 = arith.constant 0 : index
    %c0_0 = arith.constant 0 : index
    %0 = vector.load %arg0[%c0, %c0_0] : memref<8x32xf32, #tpu.memory_space<vmem>>, vector<8x32xf32>
    %c0_1 = arith.constant 0 : index
    %c0_2 = arith.constant 0 : index
    %1 = vector.load %arg1[%c0_1, %c0_2] : memref<32x128xf32, #tpu.memory_space<vmem>>, vector<32x128xf32>
    %cst = arith.constant dense<0.000000e+00> : vector<8x128xf32>
    %2 = tpu.matmul %0, %1, %cst {dimension_numbers = #tpu.dot_dimension_numbers<[1], [0], [0], [1], [0, 0, 1, 1], [], []>} : vector<8x32xf32>, vector<32x128xf32>, vector<8x128xf32> -> vector<8x128xf32>
    %c0_3 = arith.constant 0 : index
    %c0_4 = arith.constant 0 : index
    %3 = vector.load %arg2[%c0_3, %c0_4] : memref<1x128xf32, #tpu.memory_space<vmem>>, vector<1x128xf32>
    %4 = vector.broadcast %3 : vector<1x128xf32> to vector<8x128xf32>
    %5 = arith.addf %2, %4 : vector<8x128xf32>
    %cst_5 = arith.constant 0.000000e+00 : f32
    %6 = vector.broadcast %cst_5 : f32 to vector<8x128xf32>
    %7 = arith.maximumf %5, %6 : vector<8x128xf32>
    %c0_6 = arith.constant 0 : index
    %c0_7 = arith.constant 0 : index
    %8 = vector.load %arg3[%c0_6, %c0_7] : memref<128x16xf32, #tpu.memory_space<vmem>>, vector<128x16xf32>
    %cst_8 = arith.constant dense<0.000000e+00> : vector<8x16xf32>
    %9 = tpu.matmul %7, %8, %cst_8 {dimension_numbers = #tpu.dot_dimension_numbers<[1], [0], [0], [1], [0, 0, 1, 1], [], []>} : vector<8x128xf32>, vector<128x16xf32>, vector<8x16xf32> -> vector<8x16xf32>
    %c0_9 = arith.constant 0 : index
    %c0_10 = arith.constant 0 : index
    %10 = vector.load %arg4[%c0_9, %c0_10] : memref<1x16xf32, #tpu.memory_space<vmem>>, vector<1x16xf32>
    %11 = vector.broadcast %10 : vector<1x16xf32> to vector<8x16xf32>
    %12 = arith.addf %9, %11 : vector<8x16xf32>
    %c0_11 = arith.constant 0 : index
    %c0_12 = arith.constant 0 : index
    %13 = vector.load %arg5[%c0_11, %c0_12] : memref<8x16xf32, #tpu.memory_space<vmem>>, vector<8x16xf32>
    tpu.vector_store %arg5[%c0_11, %c0_12], %12 {strides = array<i32>} : memref<8x16xf32, #tpu.memory_space<vmem>>, vector<8x16xf32>,
    return
  }
}

</mosaic_0001>

<bundles_post_ra>
// kernel: disease_predictor_forward.1
= control target key start
LH: loop header
LB: loop body
LE: loop exit
PB: predicated region body
PF: predicated region fallthrough
CT: control target
= control target key end

     0   :  { %v313_v1 = vmov 0.0   ;;  %vm314_vm0 = vmmov 0   ;;  %vm33_vm1 = vcmask 261120   ;;  %s442_s0 = inlined_call_operand.vmem [shape: f32[8,32], index: 0, kind: input, shape index: {}]   ;;  %s443_s1 = inlined_call_operand.vmem [shape: f32[32,128], index: 1, kind: input, shape index: {}]   ;;  %s444_s2 = inlined_call_operand.vmem [shape: f32[1,128], index: 2, kind: input, shape index: {}]   ;;  %s445_s3 = inlined_call_operand.vmem [shape: f32[128,16], index: 3, kind: input, shape index: {}]   ;;  %s446_s4 = inlined_call_operand.vmem [shape: f32[1,16], index: 4, kind: input, shape index: {}]   ;;  %s447_s5 = inlined_call_operand.hbm [shape: f32[8,16], index: 5, kind: output, shape index: {}]  }
   0x1   :  { %v25_v0 = vld [vmem:[%s443_s1 + $0x18] sm:$0xff]  ;;  %242 = vmatprep.subr.mxu0 %v313_v1  ;;  %v24_v2 = vld [vmem:[%s443_s1 + $0x10] sm:$0xff]  ;;  %250 = vmatprep.mubr.msk.f32.mxu0 %vm314_vm0, %v313_v1  ;;  %v23_v5 = vld [vmem:[%s443_s1 + $0x8] sm:$0xff] }
   0x2   :  { %v123_v3 = vld [vmem:[%s445_s3 + $0x78] sm:$0xff]  ;;  %243 = vmatpush3.msra.mxu0 %v25_v0  ;;  %253 = vmatprep.subr.mxu1 %v313_v1  ;;  %v122_v4 = vld [vmem:[%s445_s3 + $0x70] sm:$0xff]  ;;  %v121_v6 = vld [vmem:[%s445_s3 + $0x68] sm:$0xff] }
   0x3   :  { %244 = vmatprep.subr.mxu0 %v313_v1  ;;  %254 = vmatpush3.msra.mxu1 %v123_v3  ;;  %v22_v7 = vld [vmem:[%s443_s1] sm:$0xff] }
   0x4   :  { %245 = vmatpush3.msra.mxu0 %v24_v2  ;;  %255 = vmatprep.subr.mxu1 %v313_v1  ;;  %v21_v8 = vld [vmem:[%s442_s0] sm:$0xff] }
   0x5   :  { %246 = vmatprep.subr.mxu0 %v313_v1  ;;  %256 = vmatpush3.msra.mxu1 %v122_v4  ;;  %v120_v9 = vld [vmem:[%s445_s3 + $0x60] sm:$0xff] }
   0x6   :  { %247 = vmatpush3.msra.mxu0 %v23_v5  ;;  %257 = vmatprep.subr.mxu1 %v313_v1 }
   0x7   :  { %10 = vsyncpa [#allocation3], 0  ;;  %248 = vmatprep.subr.mxu0 %v313_v1  ;;  %258 = vmatpush3.msra.mxu1 %v121_v6  ;;  %v119_v10 = vld [vmem:[%s445_s3 + $0x58] sm:$0xff]  ;;  %v118_v11 = vld [vmem:[%s445_s3 + $0x50] sm:$0xff]  ;;  %s315_s11 = smov [#allocation2]   ;;  %vm201_vm2 = vcmask 130048  }
   0x8   :  { %249 = vmatpush3.msra.mxu0 %v22_v7  ;;  %259 = vmatprep.subr.mxu1 %v313_v1  ;;  %v117_v12 = vld [vmem:[%s445_s3 + $0x48] sm:$0xff]  ;;  %v116_v13 = vld [vmem:[%s445_s3 + $0x40] sm:$0xff]  ;;  %v115_v14 = vld [vmem:[%s445_s3 + $0x38] sm:$0xff]  ;;  %s209_s0 = sshll.u32 %s315_s11, 4  ;;  %s210_s0 = int_to_ptr.vmem [resolvable:$true] %s209_s0 }
   0x9   :  { %251 = vmatmul.mubr.msk.f32.vlgmr.msra.gmra.mxu0 %vm33_vm1, %v21_v8  ;;  %260 = vmatpush3.msra.mxu1 %v120_v9  ;;  %v114_v15 = vld [vmem:[%s445_s3 + $0x30] sm:$0xff]  ;;  %v113_v16 = vld [vmem:[%s445_s3 + $0x28] sm:$0xff]  ;;  %v112_v17 = vld [vmem:[%s445_s3 + $0x20] sm:$0xff]  ;;  %p296_p1 = scmp.lt.s32.totalorder %s210_s0, %s210_s0 }
   0xa   :  { %261 = vmatprep.subr.mxu1 %v313_v1  ;;  %285 = vmatprep.mubr.msk.f32.mxu1 %vm314_vm0, %v313_v1  ;;  %v111_v18 = vld [vmem:[%s445_s3 + $0x18] sm:$0xff]  ;;  %v110_v19 = vld [vmem:[%s445_s3 + $0x10] sm:$0xff]  ;;  %v109_v20 = vld [vmem:[%s445_s3 + $0x8] sm:$0xff] }
   0xb   :  { %262 = vmatpush3.msra.mxu1 %v119_v10  ;;  %v108_v21 = vld [vmem:[%s445_s3] sm:$0xff]  ;;  %s291_s3 = scalar_lea.vmem %s210_s0, 128 }
   0xc   :  { %263 = vmatprep.subr.mxu1 %v313_v1  ;;  %v217_v22 = vld [vmem:[%s444_s2] ss:$0 sm:$0xff]  ;;  %p292_p0 = scmp.ne.s32.totalorder %s210_s0, %s291_s3  ;;  %p297_p2 = scmp.lt.s32.totalorder %s291_s3, %s291_s3 }
   0xd   :  { %264 = vmatpush3.msra.mxu1 %v118_v11  ;;  %v219_v27 = vld [vmem:[%s446_s4] ss:$0 sm:$0xff] }
   0xe   :  { %265 = vmatprep.subr.mxu1 %v313_v1  ;;  %p298_p3 = por %p297_p2, %p296_p1 }
   0xf   :  { %266 = vmatpush3.msra.mxu1 %v117_v12 }
  0x10   :  { %267 = vmatprep.subr.mxu1 %v313_v1  ;;  %p299_p4 = pnand %p298_p3, %p292_p0 }
  0x11   :  { %268 = vmatpush3.msra.mxu1 %v116_v13 }
  0x12   :  { %269 = vmatprep.subr.mxu1 %v313_v1 }
  0x13   :  { %270 = vmatpush3.msra.mxu1 %v115_v14 }
  0x14   :  { %271 = vmatprep.subr.mxu1 %v313_v1 }
  0x15   :  { %272 = vmatpush3.msra.mxu1 %v114_v15 }
  0x16   :  { %273 = vmatprep.subr.mxu1 %v313_v1 }
  0x17   :  { %274 = vmatpush3.msra.mxu1 %v113_v16 }
  0x18   :  { %275 = vmatprep.subr.mxu1 %v313_v1 }
  0x19   :  { %276 = vmatpush3.msra.mxu1 %v112_v17 }
  0x1a   :  { %277 = vmatprep.subr.mxu1 %v313_v1 }
  0x1b   :  { %278 = vmatpush3.msra.mxu1 %v111_v18 }
  0x1c   :  { %279 = vmatprep.subr.mxu1 %v313_v1 }
  0x1d   :  { %280 = vmatpush3.msra.mxu1 %v110_v19 }
  0x1e   :  { %281 = vmatprep.subr.mxu1 %v313_v1 }
  0x1f   :  { %282 = vmatpush3.msra.mxu1 %v109_v20 }
  0x20   :  { %283 = vmatprep.subr.mxu1 %v313_v1 }
  0x21   :  { %284 = vmatpush3.msra.mxu1 %v108_v21 }
  0xc9   :  { %v103_v23 = vpop.f32.mrf.mxu0 }
  0xca   :  { %v104_v24 = vadd.f32 %v217_v22, %v103_v23 }
  0xcb   :  { %v252_v25 = vpop.f32.mrf.mxu0 }
  0xcc   :  { %v107_v26 = vmax.f32 %v104_v24, 0.0 }
  0xce   :  { %286 = vmatmul.mubr.f32.vlgmr.msra.gmra.mxu1 %v107_v26 }
 0x18e   :  { %v197_v28 = vpop.f32.mrf.mxu1 }
 0x18f   :  { %v198_v29 = vadd.f32 %v219_v27, %v197_v28 }
 0x190   :  { %v287_v30 = vpop.f32.mrf.mxu1 }
 0x191   :  { %202 = vst.msk [vmem:[#allocation2] sm:$0xff] %vm201_vm2, %v198_v29 }
 0x192   :  { %302 = shalt.err (!%p299_p4)
}
 0x193   :  { %212 = dma.vmem_to_hbm [thread:$0]  %s210_s0, 128, %s447_s5, [#allocation3]  }
 0x194   :  { %311 = dma.done.wait [#allocation3], 128  }
 0x195   :  { %312 = vsyncadd [#allocation3], 4294967168 }
 0x196   :  { %216 = vsyncpa [#allocation3], 1 }

</bundles_post_ra>
